<compile_context>
chip_gen: v7x
topology: tpu7x:2x2x1
jax: 0.10.0
libtpu: 0.0.40
codegen_flags: <defaults>
</compile_context>

<pallas_src>
import jax
import jax.numpy as jnp
from jax.experimental import pallas as pl
from jax.experimental.pallas import tpu as pltpu

INPUT_SIZE = 5          # nn.Linear in_features
OUTPUT_SIZE = 2         # nn.Linear out_features
SUBLANE = 8             # TPU vreg sublane width
MAX_TILE_B = 2048       # batch rows per grid step when batch is large


def _linear_kernel(x_ref, w_ref, b_ref, o_ref):
    """y = x @ W^T + b for tiny K/N, done on the VPU (no MXU).

    x_ref : (tile_b, 5)   raw input rows (no lane padding)
    w_ref : (5, 2)        W^T, resident across grid steps
    b_ref : (1, 2)        bias, resident across grid steps
    o_ref : (tile_b, 2)   real-shaped output block
    """
    x = x_ref[...]
    w = w_ref[...]
    # Start the accumulator from the (sublane-broadcast) bias.
    acc = jnp.broadcast_to(b_ref[...], o_ref.shape).astype(jnp.float32)
    # K = 5: unrolled broadcast-multiply accumulate on the VPU.
    for k in range(INPUT_SIZE):
        acc = acc + x[:, k:k + 1] * w[k:k + 1, :]
    o_ref[...] = acc.astype(o_ref.dtype)


def _choose_tile_b(batch):
    """Pick a batch tile: big enough to amortize grid-step overhead, but with
    >= 2 grid steps for large batches so both v7x TensorCores get work."""
    if batch <= MAX_TILE_B // 2:
        # Single block; legal because block dim == full array dim.
        return batch
    half = -(-batch // 2)                                   # cdiv(batch, 2)
    half = ((half + SUBLANE - 1) // SUBLANE) * SUBLANE      # round up to 8
    return min(MAX_TILE_B, half)


def linear_pallas(x, w_t, b2):
    """(batch, 5) @ (5, 2) + (1, 2) -> (batch, 2), tiled over the batch."""
    batch, in_f = x.shape
    tile_b = _choose_tile_b(batch)
    grid = (pl.cdiv(batch, tile_b),)   # partial last block handled by Pallas
    return pl.pallas_call(
        _linear_kernel,
        out_shape=jax.ShapeDtypeStruct((batch, OUTPUT_SIZE), x.dtype),
        grid_spec=pltpu.PrefetchScalarGridSpec(
            num_scalar_prefetch=0,
            grid=grid,
            in_specs=[
                pl.BlockSpec((tile_b, in_f), lambda i: (i, 0)),
                # Weight / bias blocks stay resident across grid steps.
                pl.BlockSpec(w_t.shape, lambda i: (0, 0)),
                pl.BlockSpec(b2.shape, lambda i: (0, 0)),
            ],
            out_specs=pl.BlockSpec((tile_b, OUTPUT_SIZE), lambda i: (i, 0)),
        ),
        compiler_params=pltpu.CompilerParams(
            dimension_semantics=("parallel",)),
    )(x, w_t, b2)


def init_linear_params(key, in_features, out_features):
    """Deterministic init mirroring nn.Linear: U(-1/sqrt(in), 1/sqrt(in))."""
    kw, kb = jax.random.split(key)
    bound = 1.0 / jnp.sqrt(jnp.float32(in_features))
    # PyTorch stores weight as (out, in).
    weight = jax.random.uniform(
        kw, (out_features, in_features), jnp.float32, -bound, bound)
    bias = jax.random.uniform(kb, (out_features,), jnp.float32, -bound, bound)
    return weight, bias


def prepare_params(weight, bias):
    """One-time prep: transpose weight to (in, out) and make bias 2-D."""
    w_t = weight.T                         # (5, 2)
    b2 = bias.reshape(1, OUTPUT_SIZE)      # (1, 2)
    return w_t, b2


@jax.jit
def model_forward(x, w_t, b2):
    # Equivalent of Model.forward: self.fc(input).
    # TODO(synk): the in-forward `print(...size...)` is host-side logging, not
    # kernel compute; omitted so the script's only success output is KERNEL_OK.
    return linear_pallas(x, w_t, b2)


if __name__ == "__main__":
    key = jax.random.PRNGKey(0)
    k_param, k_x = jax.random.split(key)

    weight, bias = init_linear_params(k_param, INPUT_SIZE, OUTPUT_SIZE)
    w_t, b2 = prepare_params(weight, bias)   # hoisted out of the hot path

    batch = 8
    x = jax.random.normal(k_x, (batch, INPUT_SIZE), jnp.float32)

    y = model_forward(x, w_t, b2)
    jax.block_until_ready(y)

    # Correctness check against plain-JAX reference.
    y_ref = x @ weight.T + bias
    assert y.shape == (batch, OUTPUT_SIZE)
    assert jnp.allclose(y, y_ref, atol=1e-5, rtol=1e-5)

    print("KERNEL_OK")
</pallas_src>

<mosaic_0001>
module attributes {stable_mosaic.version = 11 : i64} {
  func.func @_linear_kernel(%arg0: i32, %arg1: memref<8x5xf32, #tpu.memory_space<vmem>>, %arg2: memref<5x2xf32, #tpu.memory_space<vmem>>, %arg3: memref<1x2xf32, #tpu.memory_space<vmem>>, %arg4: memref<8x2xf32, #tpu.memory_space<vmem>>) attributes {dimension_semantics = [#tpu.dimension_semantics<parallel>], iteration_bounds = array<i64: 1>, scalar_prefetch = 0 : i64, scratch_operands = 0 : i64, tpu.core_type = #tpu.core_type<tc>, window_params = [{transform_indices = @transform_0, window_bounds = array<i64: 8, 5>}, {pipeline_mode = #tpu.pipeline_mode<synchronous>, transform_indices = @transform_1, window_bounds = array<i64: 5, 2>}, {pipeline_mode = #tpu.pipeline_mode<synchronous>, transform_indices = @transform_2, window_bounds = array<i64: 1, 2>}, {transform_indices = @transform_3, window_bounds = array<i64: 8, 2>}]} {
    %c0 = arith.constant 0 : index
    %c0_0 = arith.constant 0 : index
    %0 = vector.load %arg1[%c0, %c0_0] : memref<8x5xf32, #tpu.memory_space<vmem>>, vector<8x5xf32>
    %c0_1 = arith.constant 0 : index
    %c0_2 = arith.constant 0 : index
    %1 = vector.load %arg2[%c0_1, %c0_2] : memref<5x2xf32, #tpu.memory_space<vmem>>, vector<5x2xf32>
    %c0_3 = arith.constant 0 : index
    %c0_4 = arith.constant 0 : index
    %2 = vector.load %arg3[%c0_3, %c0_4] : memref<1x2xf32, #tpu.memory_space<vmem>>, vector<1x2xf32>
    %3 = vector.shape_cast %2 : vector<1x2xf32> to vector<1x2xf32>
    %4 = vector.broadcast %3 : vector<1x2xf32> to vector<8x2xf32>
    %5 = vector.extract_strided_slice %0 {offsets = [0, 0], sizes = [8, 1], strides = [1, 1]} : vector<8x5xf32> to vector<8x1xf32>
    %6 = vector.extract_strided_slice %1 {offsets = [0, 0], sizes = [1, 2], strides = [1, 1]} : vector<5x2xf32> to vector<1x2xf32>
    %7 = vector.broadcast %5 : vector<8x1xf32> to vector<8x2xf32>
    %8 = vector.broadcast %6 : vector<1x2xf32> to vector<8x2xf32>
    %9 = arith.mulf %7, %8 : vector<8x2xf32>
    %10 = arith.addf %4, %9 : vector<8x2xf32>
    %11 = vector.extract_strided_slice %0 {offsets = [0, 1], sizes = [8, 1], strides = [1, 1]} : vector<8x5xf32> to vector<8x1xf32>
    %12 = vector.extract_strided_slice %1 {offsets = [1, 0], sizes = [1, 2], strides = [1, 1]} : vector<5x2xf32> to vector<1x2xf32>
    %13 = vector.broadcast %11 : vector<8x1xf32> to vector<8x2xf32>
    %14 = vector.broadcast %12 : vector<1x2xf32> to vector<8x2xf32>
    %15 = arith.mulf %13, %14 : vector<8x2xf32>
    %16 = arith.addf %10, %15 : vector<8x2xf32>
    %17 = vector.extract_strided_slice %0 {offsets = [0, 2], sizes = [8, 1], strides = [1, 1]} : vector<8x5xf32> to vector<8x1xf32>
    %18 = vector.extract_strided_slice %1 {offsets = [2, 0], sizes = [1, 2], strides = [1, 1]} : vector<5x2xf32> to vector<1x2xf32>
    %19 = vector.broadcast %17 : vector<8x1xf32> to vector<8x2xf32>
    %20 = vector.broadcast %18 : vector<1x2xf32> to vector<8x2xf32>
    %21 = arith.mulf %19, %20 : vector<8x2xf32>
    %22 = arith.addf %16, %21 : vector<8x2xf32>
    %23 = vector.extract_strided_slice %0 {offsets = [0, 3], sizes = [8, 1], strides = [1, 1]} : vector<8x5xf32> to vector<8x1xf32>
    %24 = vector.extract_strided_slice %1 {offsets = [3, 0], sizes = [1, 2], strides = [1, 1]} : vector<5x2xf32> to vector<1x2xf32>
    %25 = vector.broadcast %23 : vector<8x1xf32> to vector<8x2xf32>
    %26 = vector.broadcast %24 : vector<1x2xf32> to vector<8x2xf32>
    %27 = arith.mulf %25, %26 : vector<8x2xf32>
    %28 = arith.addf %22, %27 : vector<8x2xf32>
    %29 = vector.extract_strided_slice %0 {offsets = [0, 4], sizes = [8, 1], strides = [1, 1]} : vector<8x5xf32> to vector<8x1xf32>
    %30 = vector.extract_strided_slice %1 {offsets = [4, 0], sizes = [1, 2], strides = [1, 1]} : vector<5x2xf32> to vector<1x2xf32>
    %31 = vector.broadcast %29 : vector<8x1xf32> to vector<8x2xf32>
    %32 = vector.broadcast %30 : vector<1x2xf32> to vector<8x2xf32>
    %33 = arith.mulf %31, %32 : vector<8x2xf32>
    %34 = arith.addf %28, %33 : vector<8x2xf32>
    %c0_5 = arith.constant 0 : index
    %c0_6 = arith.constant 0 : index
    %35 = vector.load %arg4[%c0_5, %c0_6] : memref<8x2xf32, #tpu.memory_space<vmem>>, vector<8x2xf32>
    tpu.vector_store %arg4[%c0_5, %c0_6], %34 {strides = array<i32>} : memref<8x2xf32, #tpu.memory_space<vmem>>, vector<8x2xf32>,
    return
  }
  func.func @transform_0(%arg0: i32) -> (i32, i32) {
    %c0_i32 = arith.constant 0 : i32
    %c0_i32_0 = arith.constant 0 : i32
    return %arg0, %c0_i32 : i32, i32
  }
  func.func @transform_1(%arg0: i32) -> (i32, i32) {
    %c0_i32 = arith.constant 0 : i32
    %c0_i32_0 = arith.constant 0 : i32
    %c0_i32_1 = arith.constant 0 : i32
    return %c0_i32, %c0_i32_0 : i32, i32
  }
  func.func @transform_2(%arg0: i32) -> (i32, i32) {
    %c0_i32 = arith.constant 0 : i32
    %c0_i32_0 = arith.constant 0 : i32
    %c0_i32_1 = arith.constant 0 : i32
    return %c0_i32, %c0_i32_0 : i32, i32
  }
  func.func @transform_3(%arg0: i32) -> (i32, i32) {
    %c0_i32 = arith.constant 0 : i32
    %c0_i32_0 = arith.constant 0 : i32
    return %arg0, %c0_i32 : i32, i32
  }
}

</mosaic_0001>

<bundles_post_ra>
// kernel: model_forward.1
= control target key start
LH: loop header
LB: loop body
LE: loop exit
PB: predicated region body
PF: predicated region fallthrough
CT: control target
= control target key end

     0   :  { %v92_v0 = vmov 0   ;;  %v93_v1 = vmov 2   ;;  %v94_v3 = vmov 1   ;;  %v95_v4 = vmov 3   ;;  %s129_s0 = inlined_call_operand.vmem [shape: f32[8,5], index: 0, kind: input, shape index: {}]   ;;  %s130_s1 = inlined_call_operand.vmem [shape: f32[5,2], index: 1, kind: input, shape index: {}]   ;;  %s131_s2 = inlined_call_operand.vmem [shape: f32[1,2], index: 2, kind: input, shape index: {}]   ;;  %s132_s3 = inlined_call_operand.vmem [shape: f32[8,2], index: 3, kind: output, shape index: {}]  }
   0x1   :  { %86 = vset.pattern.permute.xlu0 %v92_v0  ;;  %88 = vset.pattern.permute.xlu1 %v93_v1  ;;  %v14_v2 = vld [vmem:[%s129_s0] sm:$0xff]  ;;  %v96_v5 = vmov 4   ;;  %v28_v6 = vlaneseq  ;;  %vm74_vm0 = vcmask 15360  }
   0x2   :  { %25 = vperm.xlu0 %86, %v14_v2   ;;  %45 = vperm.xlu1 %88, %v14_v2   ;;  %v15_v9 = vld [vmem:[%s130_s1] sm:$0x1f] }
   0x3   :  { %v29_v7 = vshrl.u32 %v28_v6, 7  ;;  %v80_v18 = vld [vmem:[%s131_s2] ss:$0 sm:$0xff] }
   0x5   :  { %v30_v8 = vsub.s32 0, %v29_v7  ;;  %v40_v11 = vsub.s32 1, %v29_v7  ;;  %v50_v13 = vsub.s32 2, %v29_v7  ;;  %v60_v17 = vsub.s32 3, %v29_v7 }
   0x6   :  { %87 = vset.pattern.permute.xlu0 %v94_v3  ;;  %89 = vset.pattern.permute.xlu1 %v95_v4  ;;  %v70_v19 = vsub.s32 4, %v29_v7 }
   0x7   :  { %35 = vperm.xlu0 %87, %v14_v2   ;;  %55 = vperm.xlu1 %89, %v14_v2   ;;  %v31_v10 = vrot.slane %v15_v9, %v30_v8  ;;  %v41_v16 = vrot.slane %v15_v9, %v40_v11  ;;  %v51_v20 = vrot.slane %v15_v9, %v50_v13 }
   0x8   :  { %v61_v25 = vrot.slane %v15_v9, %v60_v17  ;;  %v71_v26 = vrot.slane %v15_v9, %v70_v19 }
   0xb   :  { %90 = vset.pattern.permute.xlu1 %v96_v5  ;;  %91 = vset.pattern.permute.xlu0 %v96_v5 }
   0xc   :  { %65 = vperm.xlu1 %90, %v14_v2  }
  0x81   :  { %v26_v12 = vpop.permute.xlu0 %25  ;;  %v46_v14 = vpop.permute.xlu1 %45 }
  0x82   :  { %v32_v15 = vmul.f32 %v31_v10, %v26_v12  ;;  %v52_v27 = vmul.f32 %v51_v20, %v46_v14 }
  0x84   :  { %v33_v23 = vadd.f32 %v80_v18, %v32_v15 }
  0x86   :  { %v36_v21 = vpop.permute.xlu0 %35  ;;  %v56_v22 = vpop.permute.xlu1 %55 }
  0x87   :  { %v42_v24 = vmul.f32 %v41_v16, %v36_v21  ;;  %v62_v30 = vmul.f32 %v61_v25, %v56_v22 }
  0x89   :  { %v43_v28 = vadd.f32 %v42_v24, %v33_v23 }
  0x8b   :  { %v53_v29 = vadd.f32 %v52_v27, %v43_v28  ;;  %v66_v31 = vpop.permute.xlu1 %65 }
  0x8c   :  { %v72_v32 = vmul.f32 %v71_v26, %v66_v31 }
  0x8d   :  { %v63_v33 = vadd.f32 %v62_v30, %v53_v29 }
  0x8f   :  { %v73_v34 = vadd.f32 %v72_v32, %v63_v33 }
  0x91   :  { %75 = vst.msk [vmem:[%s132_s3] sm:$0xff] %vm74_vm0, %v73_v34 }

</bundles_post_ra>
